<compile_context>
chip_gen: v7x
topology: tpu7x:2x2x1
jax: 0.10.0
libtpu: 0.0.40
codegen_flags: <defaults>
</compile_context>

<pallas_src>
import functools

import jax
import jax.numpy as jnp
from jax.experimental import pallas as pl
from jax.experimental.pallas import tpu as pltpu


def _vnet_kernel(x_ref, w1_ref, b1_ref, w2_ref, b2_ref, w3t_ref, b3_ref,
                 out_ref, *, act_dtype):
    # x_ref:   [n_in,  TM]   (batch on the lane axis), f32
    # w1_ref:  [n_hid, n_in]  f32    b1_ref: [n_hid, 1] f32
    # w2_ref:  [n_hid, n_hid] bf16   b2_ref: [n_hid, 1] f32
    # w3t_ref: [n_hid, n_out] f32    b3_ref: [n_out, 1] f32
    # out_ref: [n_out, TM]    f32
    n_in = x_ref.shape[0]
    n_out = out_ref.shape[0]

    x = x_ref[...]
    w1 = w1_ref[...]

    # ---- layer 1: K = n_in (tiny) -> VPU broadcast MACs, skip the MXU ------
    acc = b1_ref[...]                                   # [n_hid, 1] -> bcast
    for k in range(n_in):                               # static, unrolled
        acc = acc + w1[:, k:k + 1] * x[k:k + 1, :]      # [n_hid, TM]
    h1 = jnp.tanh(acc.astype(act_dtype))                # bf16 tanh on v6e/v7x

    # ---- layer 2: the only real matmul (n_hid x n_hid) -> MXU, bf16 in -----
    z2 = jnp.dot(w2_ref[...], h1.astype(jnp.bfloat16),
                 preferred_element_type=jnp.float32) + b2_ref[...]
    h2 = jnp.tanh(z2.astype(act_dtype))                 # [n_hid, TM]

    # ---- layer 3: n_out == 1 -> elementwise mul + sublane reduce, no MXU ---
    h2_f32 = h2.astype(jnp.float32)
    if n_out == 1:
        v = jnp.sum(w3t_ref[...] * h2_f32, axis=0, keepdims=True) + b3_ref[...]
    else:
        v = jax.lax.dot_general(
            w3t_ref[...], h2_f32, (((0,), (0,)), ((), ())),
            preferred_element_type=jnp.float32) + b3_ref[...]

    out_ref[...] = v.astype(out_ref.dtype)              # lane-dense [n_out, TM]


def _device_kind():
    try:
        return jax.devices()[0].device_kind.lower()
    except Exception:
        return ""


def vnet_forward(x, params, *, tile_m=8192, transposed_input=False):
    """Fused VNet forward.

    x: [batch, n_input] f32  (or [n_input, batch] if transposed_input=True,
       which avoids the wrapper-side transpose HBM pass entirely).
    params: dict with w1, b1, w2, b2, w3t, b3 (all f32).
    Returns: [batch, n_output] f32.
    """
    w1, b1 = params["w1"], params["b1"]
    w2, b2 = params["w2"], params["b2"]
    w3t, b3 = params["w3t"], params["b3"]

    if transposed_input:
        n_in, batch = x.shape
        x_t = x
    else:
        batch, n_in = x.shape
        # TODO(synk): have the producer emit [n_in, batch] directly to avoid
        # this extra HBM pass; kept here so the PyTorch layout still works.
        x_t = x.T

    n_hid = w2.shape[0]
    n_out = w3t.shape[1]

    kind = _device_kind()
    is_v7x = "v7" in kind
    # bf16 EUP/VPU exists on v6e/v7x; v5e (and older) keep elementwise in f32.
    act_dtype = jnp.bfloat16 if ("v6" in kind or is_v7x) else jnp.float32

    # ---- tile sizing ---------------------------------------------------------
    lane = 128
    batch_128 = ((batch + lane - 1) // lane) * lane
    tm = min(tile_m, batch_128, 32768)
    tm = max(lane, (tm // lane) * lane)

    # VMEM budget: double-buffered x/out tiles + ~4 live [n_hid, tm] f32 slabs.
    bytes_per_lane = 2 * 4 * (n_in + n_out) + 4 * 4 * n_hid
    vmem_budget = 20 * 1024 * 1024
    if bytes_per_lane * tm > vmem_budget:
        tm = max(lane, (vmem_budget // bytes_per_lane // lane) * lane)

    # v7x megacore: keep >= 2 grid steps so both TensorCores get work.
    if is_v7x and batch_128 >= 2 * lane:
        half = ((batch_128 // 2 + lane - 1) // lane) * lane
        tm = min(tm, half)

    grid_m = pl.cdiv(batch, tm)

    # Pre-cast the MXU weight once (bf16-native MXU on all supported chips).
    w2_mxu = w2.astype(jnp.bfloat16)

    const = lambda shape: pl.BlockSpec(shape, lambda i: (0, 0))

    param_bytes = 4 * (w1.size + b1.size + w2.size + b2.size + w3t.size + b3.size)
    cost = pl.CostEstimate(
        flops=2 * n_hid * (n_in + n_hid + n_out) * batch,
        transcendentals=2 * n_hid * batch,
        bytes_accessed=4 * batch * (n_in + n_out) + param_bytes,
    )

    kernel = functools.partial(_vnet_kernel, act_dtype=act_dtype)

    out_t = pl.pallas_call(
        kernel,
        out_shape=jax.ShapeDtypeStruct((n_out, batch), jnp.float32),
        grid_spec=pltpu.PrefetchScalarGridSpec(
            num_scalar_prefetch=0,
            grid=(grid_m,),
            in_specs=[
                pl.BlockSpec((n_in, tm), lambda i: (0, i)),   # x tile, batch on lanes
                const(w1.shape), const(b1.shape),
                const(w2_mxu.shape), const(b2.shape),
                const(w3t.shape), const(b3.shape),
            ],
            out_specs=pl.BlockSpec((n_out, tm), lambda i: (0, i)),
        ),
        compiler_params=pltpu.CompilerParams(
            dimension_semantics=("parallel",),                # megacore on v7x
            vmem_limit_bytes=32 * 1024 * 1024,
        ),
        cost_estimate=cost,
    )(x_t, w1, b1, w2_mxu, b2, w3t, b3)

    # Back to PyTorch layout [batch, n_out] (ragged trailing block was masked).
    return out_t.T


def init_vnet_params(key, n_input, n_hidden, n_output):
    """Deterministic init mimicking torch.nn.Linear default U(-1/sqrt(fan_in), +)."""
    keys = jax.random.split(key, 6)

    def linear(kw, kb, fan_in, fan_out):
        bound = 1.0 / (float(fan_in) ** 0.5)
        w = jax.random.uniform(kw, (fan_out, fan_in), jnp.float32, -bound, bound)
        b = jax.random.uniform(kb, (fan_out, 1), jnp.float32, -bound, bound)
        return w, b

    w1, b1 = linear(keys[0], keys[1], n_input, n_hidden)    # [n_hid, n_in]
    w2, b2 = linear(keys[2], keys[3], n_hidden, n_hidden)   # [n_hid, n_hid]
    w3, b3 = linear(keys[4], keys[5], n_hidden, n_output)   # [n_out, n_hid]
    return {"w1": w1, "b1": b1, "w2": w2, "b2": b2, "w3t": w3.T, "b3": b3}


def _reference(x, params):
    h1 = jnp.tanh(x @ params["w1"].T + params["b1"].T)
    h2 = jnp.tanh(h1 @ params["w2"].T + params["b2"].T)
    return h2 @ params["w3t"] + params["b3"].T


if __name__ == "__main__":
    # Shapes consistent with the Lorenz setup: 3-d state input, scalar V output.
    n_input, n_hidden, n_output = 3, 32, 1

    key = jax.random.PRNGKey(0)
    kx, kx2, kp = jax.random.split(key, 3)
    params = init_vnet_params(kp, n_input, n_hidden, n_output)

    fwd = jax.jit(vnet_forward)

    # Small batch (single ragged tile).
    x_small = jax.random.normal(kx, (8, n_input), dtype=jnp.float32)
    out_small = jax.block_until_ready(fwd(x_small, params))
    ref_small = _reference(x_small, params)
    assert out_small.shape == (8, n_output)
    assert jnp.allclose(out_small, ref_small, atol=5e-2, rtol=5e-2), \
        float(jnp.abs(out_small - ref_small).max())

    # Ragged, non-multiple-of-128 batch exercising masked trailing lanes.
    x_med = jax.random.normal(kx2, (300, n_input), dtype=jnp.float32)
    out_med = jax.block_until_ready(fwd(x_med, params))
    ref_med = _reference(x_med, params)
    assert out_med.shape == (300, n_output)
    assert jnp.allclose(out_med, ref_med, atol=5e-2, rtol=5e-2), \
        float(jnp.abs(out_med - ref_med).max())

    print("KERNEL_OK")
</pallas_src>

<mosaic_0001>
module attributes {stable_mosaic.version = 11 : i64} {
  func.func @_vnet_kernel(%arg0: i32, %arg1: memref<3x128xf32, #tpu.memory_space<vmem>>, %arg2: memref<32x3xf32, #tpu.memory_space<vmem>>, %arg3: memref<32x1xf32, #tpu.memory_space<vmem>>, %arg4: memref<32x32xbf16, #tpu.memory_space<vmem>>, %arg5: memref<32x1xf32, #tpu.memory_space<vmem>>, %arg6: memref<32x1xf32, #tpu.memory_space<vmem>>, %arg7: memref<1x1xf32, #tpu.memory_space<vmem>>, %arg8: memref<1x128xf32, #tpu.memory_space<vmem>>) attributes {dimension_semantics = [#tpu.dimension_semantics<parallel>], iteration_bounds = array<i64: 1>, scalar_prefetch = 0 : i64, scratch_operands = 0 : i64, tpu.core_type = #tpu.core_type<tc>, window_params = [{transform_indices = @transform_0, window_bounds = array<i64: 3, 128>}, {pipeline_mode = #tpu.pipeline_mode<synchronous>, transform_indices = @transform_1, window_bounds = array<i64: 32, 3>}, {pipeline_mode = #tpu.pipeline_mode<synchronous>, transform_indices = @transform_2, window_bounds = array<i64: 32, 1>}, {pipeline_mode = #tpu.pipeline_mode<synchronous>, transform_indices = @transform_3, window_bounds = array<i64: 32, 32>}, {pipeline_mode = #tpu.pipeline_mode<synchronous>, transform_indices = @transform_4, window_bounds = array<i64: 32, 1>}, {pipeline_mode = #tpu.pipeline_mode<synchronous>, transform_indices = @transform_5, window_bounds = array<i64: 32, 1>}, {pipeline_mode = #tpu.pipeline_mode<synchronous>, transform_indices = @transform_6, window_bounds = array<i64: 1, 1>}, {transform_indices = @transform_7, window_bounds = array<i64: 1, 128>}]} {
    %c0 = arith.constant 0 : index
    %c0_0 = arith.constant 0 : index
    %0 = vector.load %arg1[%c0, %c0_0] : memref<3x128xf32, #tpu.memory_space<vmem>>, vector<3x128xf32>
    %c0_1 = arith.constant 0 : index
    %c0_2 = arith.constant 0 : index
    %1 = vector.load %arg2[%c0_1, %c0_2] : memref<32x3xf32, #tpu.memory_space<vmem>>, vector<32x3xf32>
    %c0_3 = arith.constant 0 : index
    %c0_4 = arith.constant 0 : index
    %2 = vector.load %arg3[%c0_3, %c0_4] : memref<32x1xf32, #tpu.memory_space<vmem>>, vector<32x1xf32>
    %3 = vector.extract_strided_slice %1 {offsets = [0, 0], sizes = [32, 1], strides = [1, 1]} : vector<32x3xf32> to vector<32x1xf32>
    %4 = vector.extract_strided_slice %0 {offsets = [0, 0], sizes = [1, 128], strides = [1, 1]} : vector<3x128xf32> to vector<1x128xf32>
    %5 = vector.broadcast %3 : vector<32x1xf32> to vector<32x128xf32>
    %6 = vector.broadcast %4 : vector<1x128xf32> to vector<32x128xf32>
    %7 = arith.mulf %5, %6 : vector<32x128xf32>
    %8 = vector.broadcast %2 : vector<32x1xf32> to vector<32x128xf32>
    %9 = arith.addf %8, %7 : vector<32x128xf32>
    %10 = vector.extract_strided_slice %1 {offsets = [0, 1], sizes = [32, 1], strides = [1, 1]} : vector<32x3xf32> to vector<32x1xf32>
    %11 = vector.extract_strided_slice %0 {offsets = [1, 0], sizes = [1, 128], strides = [1, 1]} : vector<3x128xf32> to vector<1x128xf32>
    %12 = vector.broadcast %10 : vector<32x1xf32> to vector<32x128xf32>
    %13 = vector.broadcast %11 : vector<1x128xf32> to vector<32x128xf32>
    %14 = arith.mulf %12, %13 : vector<32x128xf32>
    %15 = arith.addf %9, %14 : vector<32x128xf32>
    %16 = vector.extract_strided_slice %1 {offsets = [0, 2], sizes = [32, 1], strides = [1, 1]} : vector<32x3xf32> to vector<32x1xf32>
    %17 = vector.extract_strided_slice %0 {offsets = [2, 0], sizes = [1, 128], strides = [1, 1]} : vector<3x128xf32> to vector<1x128xf32>
    %18 = vector.broadcast %16 : vector<32x1xf32> to vector<32x128xf32>
    %19 = vector.broadcast %17 : vector<1x128xf32> to vector<32x128xf32>
    %20 = arith.mulf %18, %19 : vector<32x128xf32>
    %21 = arith.addf %15, %20 : vector<32x128xf32>
    %22 = math.tanh %21 : vector<32x128xf32>
    %c0_5 = arith.constant 0 : index
    %c0_6 = arith.constant 0 : index
    %23 = vector.load %arg4[%c0_5, %c0_6] : memref<32x32xbf16, #tpu.memory_space<vmem>>, vector<32x32xbf16>
    %24 = arith.truncf %22 : vector<32x128xf32> to vector<32x128xbf16>
    %cst = arith.constant dense<0.000000e+00> : vector<32x128xf32>
    %25 = tpu.matmul %23, %24, %cst {dimension_numbers = #tpu.dot_dimension_numbers<[1], [0], [0], [1], [0, 0, 1, 1], [], []>} : vector<32x32xbf16>, vector<32x128xbf16>, vector<32x128xf32> -> vector<32x128xf32>
    %c0_7 = arith.constant 0 : index
    %c0_8 = arith.constant 0 : index
    %26 = vector.load %arg5[%c0_7, %c0_8] : memref<32x1xf32, #tpu.memory_space<vmem>>, vector<32x1xf32>
    %27 = vector.broadcast %26 : vector<32x1xf32> to vector<32x128xf32>
    %28 = arith.addf %25, %27 : vector<32x128xf32>
    %29 = math.tanh %28 : vector<32x128xf32>
    %c0_9 = arith.constant 0 : index
    %c0_10 = arith.constant 0 : index
    %30 = vector.load %arg6[%c0_9, %c0_10] : memref<32x1xf32, #tpu.memory_space<vmem>>, vector<32x1xf32>
    %31 = vector.broadcast %30 : vector<32x1xf32> to vector<32x128xf32>
    %32 = arith.mulf %31, %29 : vector<32x128xf32>
    %cst_11 = arith.constant dense<0.000000e+00> : vector<128xf32>
    %33 = vector.multi_reduction <add>, %32, %cst_11 [0] : vector<32x128xf32> to vector<128xf32>
    %34 = vector.shape_cast %33 : vector<128xf32> to vector<1x128xf32>
    %c0_12 = arith.constant 0 : index
    %c0_13 = arith.constant 0 : index
    %35 = vector.load %arg7[%c0_12, %c0_13] : memref<1x1xf32, #tpu.memory_space<vmem>>, vector<1x1xf32>
    %36 = vector.broadcast %35 : vector<1x1xf32> to vector<1x128xf32>
    %37 = arith.addf %34, %36 : vector<1x128xf32>
    %c0_14 = arith.constant 0 : index
    %c0_15 = arith.constant 0 : index
    %38 = vector.load %arg8[%c0_14, %c0_15] : memref<1x128xf32, #tpu.memory_space<vmem>>, vector<1x128xf32>
    tpu.vector_store %arg8[%c0_14, %c0_15], %37 {strides = array<i32>} : memref<1x128xf32, #tpu.memory_space<vmem>>, vector<1x128xf32>,
    return
  }
  func.func @transform_0(%arg0: i32) -> (i32, i32) {
    %c0_i32 = arith.constant 0 : i32
    %c0_i32_0 = arith.constant 0 : i32
    return %c0_i32, %arg0 : i32, i32
  }
  func.func @transform_1(%arg0: i32) -> (i32, i32) {
    %c0_i32 = arith.constant 0 : i32
    %c0_i32_0 = arith.constant 0 : i32
    %c0_i32_1 = arith.constant 0 : i32
    return %c0_i32, %c0_i32_0 : i32, i32
  }
  func.func @transform_2(%arg0: i32) -> (i32, i32) {
    %c0_i32 = arith.constant 0 : i32
    %c0_i32_0 = arith.constant 0 : i32
    %c0_i32_1 = arith.constant 0 : i32
    return %c0_i32, %c0_i32_0 : i32, i32
  }
  func.func @transform_3(%arg0: i32) -> (i32, i32) {
    %c0_i32 = arith.constant 0 : i32
    %c0_i32_0 = arith.constant 0 : i32
    %c0_i32_1 = arith.constant 0 : i32
    return %c0_i32, %c0_i32_0 : i32, i32
  }
  func.func @transform_4(%arg0: i32) -> (i32, i32) {
    %c0_i32 = arith.constant 0 : i32
    %c0_i32_0 = arith.constant 0 : i32
    %c0_i32_1 = arith.constant 0 : i32
    return %c0_i32, %c0_i32_0 : i32, i32
  }
  func.func @transform_5(%arg0: i32) -> (i32, i32) {
    %c0_i32 = arith.constant 0 : i32
    %c0_i32_0 = arith.constant 0 : i32
    %c0_i32_1 = arith.constant 0 : i32
    return %c0_i32, %c0_i32_0 : i32, i32
  }
  func.func @transform_6(%arg0: i32) -> (i32, i32) {
    %c0_i32 = arith.constant 0 : i32
    %c0_i32_0 = arith.constant 0 : i32
    %c0_i32_1 = arith.constant 0 : i32
    return %c0_i32, %c0_i32_0 : i32, i32
  }
  func.func @transform_7(%arg0: i32) -> (i32, i32) {
    %c0_i32 = arith.constant 0 : i32
    %c0_i32_0 = arith.constant 0 : i32
    return %c0_i32, %arg0 : i32, i32
  }
}

</mosaic_0001>

<bundles_post_ra>
// kernel: vnet_forward.1
= control target key start
LH: loop header
LB: loop body
LE: loop exit
PB: predicated region body
PF: predicated region fallthrough
CT: control target
= control target key end

     0   :  { %s515_s0 = inlined_call_operand.vmem [shape: f32[3,8], index: 0, kind: input, shape index: {}]   ;;  %s516_s1 = inlined_call_operand.vmem [shape: f32[32,3], index: 1, kind: input, shape index: {}]   ;;  %s517_s2 = inlined_call_operand.vmem [shape: f32[32,1], index: 2, kind: input, shape index: {}]   ;;  %s518_s3 = inlined_call_operand.vmem [shape: bf16[32,32], index: 3, kind: input, shape index: {}]   ;;  %s519_s4 = inlined_call_operand.vmem [shape: f32[32,1], index: 4, kind: input, shape index: {}]   ;;  %s520_s5 = inlined_call_operand.vmem [shape: f32[32,1], index: 5, kind: input, shape index: {}]   ;;  %s521_s6 = inlined_call_operand.<no memory space> [shape: f32[1,1], index: 6, kind: input, shape index: {}]   ;;  %s522_s7 = inlined_call_operand.hbm [shape: f32[1,8], index: 7, kind: output, shape index: {}]  }
   0x1   :  { %v12_v0 = vstv %s521_s6 }
   0x2   :  { %13 = vst [vmem:[#allocation2] sm:$0x1] %v12_v0 }
   0x3   :  { %v35_v1 = vld [vmem:[%s517_s2] sm:$0xff]  ;;  %v388_v3 = vmov 0   ;;  %v36_v4 = vld [vmem:[%s517_s2 + $0x8] sm:$0xff] }
   0x4   :  { %v31_v2 = vld [vmem:[%s516_s1] sm:$0xff]  ;;  %335 = vset.pattern.permute.xlu1 %v388_v3  ;;  %334 = vset.pattern.permute.xlu0 %v388_v3  ;;  %v32_v5 = vld [vmem:[%s516_s1 + $0x8] sm:$0xff] }
   0x5   :  { %69 = vperm.xlu1 %335, %v35_v1   ;;  %41 = vperm.xlu0 %334, %v31_v2  }
   0x6   :  { %14 = vsyncpa [#allocation4], 0  ;;  %v34_v6 = vld [vmem:[%s516_s1 + $0x18] sm:$0xff]  ;;  %v389_v7 = vmov 1   ;;  %v37_v8 = vld [vmem:[%s517_s2 + $0x10] sm:$0xff]  ;;  %v390_v10 = vmov 2   ;;  %v59_v22 = vlaneseq }
   0x7   :  { %v33_v9 = vld [vmem:[%s516_s1 + $0x10] sm:$0xff]  ;;  %v38_v11 = vld [vmem:[%s517_s2 + $0x18] sm:$0xff]  ;;  %v346_v12 = vld [vmem:[%s518_s3] sm:$0xff]   ;;  %vm191_vm0 = vcmask 261120  }
   0x8   :  { %326 = vmatprep.mubr.msk.bf16.mxu0 %vm191_vm0, %v346_v12  ;;  %v157_v13 = vld [vmem:[%s519_s4] sm:$0xff]  ;;  %v159_v14 = vld [vmem:[%s519_s4 + $0x10] sm:$0xff]  ;;  %v158_v15 = vld [vmem:[%s519_s4 + $0x8] sm:$0xff]  ;;  %v487_v25 = vshrl.u32 %v59_v22, 7 }
   0x9   :  { %74 = vperm.xlu1 %335, %v36_v4   ;;  %46 = vperm.xlu0 %334, %v32_v5   ;;  %v252_v16 = vld [vmem:[%s520_s5 + $0x8] sm:$0xff]  ;;  %v160_v17 = vld [vmem:[%s519_s4 + $0x18] sm:$0xff]  ;;  %v251_v19 = vld [vmem:[%s520_s5] sm:$0xff] }
   0xa   :  { %v254_v18 = vld [vmem:[%s520_s5 + $0x18] sm:$0xff]  ;;  %v253_v20 = vld [vmem:[%s520_s5 + $0x10] sm:$0xff]  ;;  %v288_v21 = vld [vmem:[#allocation2] sm:$0x1]  ;;  %v61_v28 = vsub.s32 0, %v487_v25  ;;  %v109_v33 = vsub.s32 1, %v487_v25 }
   0xb   :  { %v30_v29 = vld [vmem:[%s515_s0] sm:$0x7]  ;;  %v137_v35 = vsub.s32 2, %v487_v25 }
   0xc   :  { %v62_v32 = vrot.slane %v30_v29, %v61_v28  ;;  %v110_v38 = vrot.slane %v30_v29, %v109_v33 }
   0xd   :  { %336 = vset.pattern.permute.xlu1 %v389_v7  ;;  %56 = vperm.xlu0 %334, %v34_v6   ;;  %v138_v39 = vrot.slane %v30_v29, %v137_v35 }
   0xe   :  { %96 = vperm.xlu1 %336, %v32_v5  }
  0x11   :  { %79 = vperm.xlu0 %334, %v37_v8  }
  0x12   :  { %337 = vset.pattern.permute.xlu1 %v388_v3 }
  0x13   :  { %51 = vperm.xlu1 %337, %v33_v9  }
  0x15   :  { %339 = vset.pattern.permute.xlu0 %v389_v7 }
  0x16   :  { %92 = vperm.xlu0 %339, %v31_v2  }
  0x17   :  { %338 = vset.pattern.permute.xlu1 %v390_v10 }
  0x18   :  { %120 = vperm.xlu1 %338, %v31_v2  }
  0x1a   :  { %100 = vperm.xlu0 %339, %v33_v9  }
  0x1c   :  { %124 = vperm.xlu1 %338, %v32_v5  }
  0x1e   :  { %343 = vset.pattern.permute.xlu0 %v390_v10 }
  0x1f   :  { %132 = vperm.xlu0 %343, %v34_v6  }
  0x20   :  { %340 = vset.pattern.permute.xlu1 %v388_v3 }
  0x21   :  { %84 = vperm.xlu1 %340, %v38_v11  }
  0x23   :  { %345 = vset.pattern.permute.xlu0 %v388_v3 }
  0x24   :  { %173 = vperm.xlu0 %345, %v159_v14  }
  0x25   :  { %341 = vset.pattern.permute.xlu1 %v389_v7 }
  0x26   :  { %104 = vperm.xlu1 %341, %v34_v6  }
  0x28   :  { %262 = vperm.xlu0 %345, %v252_v16  }
  0x2a   :  { %342 = vset.pattern.permute.xlu1 %v390_v10 }
  0x2b   :  { %128 = vperm.xlu1 %342, %v33_v9  }
  0x2c   :  { %272 = vperm.xlu0 %345, %v254_v18  }
  0x2f   :  { %344 = vset.pattern.permute.xlu1 %v388_v3 }
  0x30   :  { %163 = vperm.xlu1 %344, %v157_v13   ;;  %v347_v13 = vld [vmem:[%s518_s3 + $0x8] sm:$0xff]   ;;  %s391_s3 = smov [#allocation3]  }
  0x31   :  { %s306_s11 = sshll.u32 %s391_s3, 4  ;;  %s307_s11 = int_to_ptr.vmem [resolvable:$true] %s306_s11 }
  0x32   :  { %s364_s12 = scalar_lea.vmem %s307_s11, 16  ;;  %s368_s13 = scalar_lea.vmem %s307_s11, 32 }
  0x33   :  { %p365_p0 = scmp.ne.s32.totalorder %s307_s11, %s364_s12  ;;  %p369_p1 = scmp.lt.s32.totalorder %s307_s11, %s307_s11 }
  0x34   :  { %168 = vperm.xlu1 %344, %v158_v15   ;;  %p370_p2 = scmp.lt.s32.totalorder %s368_s13, %s364_s12 }
  0x36   :  { %p371_p3 = por %p370_p2, %p369_p1 }
  0x38   :  { %178 = vperm.xlu1 %344, %v160_v17   ;;  %p372_p4 = pnand %p371_p3, %p365_p0 }
  0x3c   :  { %257 = vperm.xlu1 %344, %v251_v19  }
  0x40   :  { %267 = vperm.xlu1 %344, %v253_v20  }
  0x44   :  { %291 = vperm.xlu1 %344, %v288_v21  }
  0x84   :  { %v70_v23 = vpop.permute.xlu1 %69  ;;  %v42_v24 = vpop.permute.xlu0 %41 }
  0x85   :  { %v63_v36 = vmul.f32 %v62_v32, %v42_v24 }
  0x87   :  { %v87_v41 = vadd.f32 %v70_v23, %v63_v36 }
  0x88   :  { %v75_v26 = vpop.permute.xlu1 %74  ;;  %v47_v27 = vpop.permute.xlu0 %46 }
  0x89   :  { %v64_v42 = vmul.f32 %v62_v32, %v47_v27 }
  0x8b   :  { %v88_v48 = vadd.f32 %v75_v26, %v64_v42 }
  0x8c   :  { %v57_v30 = vpop.permute.xlu0 %56 }
  0x8d   :  { %v97_v31 = vpop.permute.xlu1 %96  ;;  %v66_v57 = vmul.f32 %v62_v32, %v57_v30 }
  0x8e   :  { %v112_v45 = vmul.f32 %v110_v38, %v97_v31 }
  0x90   :  { %v80_v34 = vpop.permute.xlu0 %79  ;;  %v116_v51 = vadd.f32 %v112_v45, %v88_v48 }
  0x92   :  { %v52_v37 = vpop.permute.xlu1 %51 }
  0x93   :  { %v65_v58 = vmul.f32 %v62_v32, %v52_v37 }
  0x95   :  { %v93_v40 = vpop.permute.xlu0 %92  ;;  %v89_v2 = vadd.f32 %v80_v34, %v65_v58 }
  0x96   :  { %v111_v43 = vmul.f32 %v110_v38, %v93_v40 }
  0x97   :  { %v121_v44 = vpop.permute.xlu1 %120 }
  0x98   :  { %v115_v46 = vadd.f32 %v111_v43, %v87_v41  ;;  %v139_v47 = vmul.f32 %v138_v39, %v121_v44 }
  0x99   :  { %v101_v54 = vpop.permute.xlu0 %100 }
  0x9a   :  { %v143_v49 = vadd.f32 %v139_v47, %v115_v46  ;;  %v113_v63 = vmul.f32 %v110_v38, %v101_v54 }
  0x9b   :  { %v125_v50 = vpop.permute.xlu1 %124 }
  0x9c   :  { %v140_v52 = vmul.f32 %v138_v39, %v125_v50  ;;  %348 = vtanh.f32 %v143_v49  ;;  %v117_v6 = vadd.f32 %v113_v63, %v89_v2 }
  0x9e   :  { %v144_v53 = vadd.f32 %v140_v52, %v116_v51  ;;  %v133_v56 = vpop.permute.xlu0 %132 }
  0x9f   :  { %v142_v62 = vmul.f32 %v138_v39, %v133_v56 }
  0xa0   :  { %350 = vtanh.f32 %v144_v53  ;;  %v85_v55 = vpop.permute.xlu1 %84 }
  0xa1   :  { %v90_v60 = vadd.f32 %v85_v55, %v66_v57 }
  0xa3   :  { %v174_v16 = vpop.permute.xlu0 %173 }
  0xa5   :  { %v105_v59 = vpop.permute.xlu1 %104 }
  0xa6   :  { %v114_v61 = vmul.f32 %v110_v38, %v105_v59  ;;  %v349_v1 = vpop.eup %348 }
  0xa7   :  { %v263_v30 = vpop.permute.xlu0 %262 }
  0xa8   :  { %v118_v0 = vadd.f32 %v114_v61, %v90_v60 }
  0xaa   :  { %v351_v3 = vpop.eup %350  ;;  %v146_v4 = vadd.f32 %v142_v62, %v118_v0  ;;  %v129_v5 = vpop.permute.xlu1 %128 }
  0xab   :  { %v141_v7 = vmul.f32 %v138_v39, %v129_v5  ;;  %v155_v8 = vpack.c.bf16 %v351_v3, %v349_v1  ;;  %v273_v39 = vpop.permute.xlu0 %272 }
  0xac   :  { %352 = vtanh.f32 %v146_v4 }
  0xad   :  { %v145_v9 = vadd.f32 %v141_v7, %v117_v6  ;;  %322 = vmatprep.subr.bf16.mxu0 %v155_v8 }
  0xae   :  { %323 = vmatpush3.bf16.msra.mxu0 %v155_v8 }
  0xaf   :  { %354 = vtanh.f32 %v145_v9  ;;  %v164_v14 = vpop.permute.xlu1 %163 }
  0xb3   :  { %v169_v15 = vpop.permute.xlu1 %168 }
  0xb6   :  { %v353_v10 = vpop.eup %352 }
  0xb7   :  { %v179_v22 = vpop.permute.xlu1 %178 }
  0xb9   :  { %v355_v11 = vpop.eup %354 }
  0xba   :  { %v156_v12 = vpack.c.bf16 %v353_v10, %v355_v11 }
  0xbb   :  { %v258_v27 = vpop.permute.xlu1 %257 }
  0xbc   :  { %324 = vmatprep.subr.bf16.mxu0 %v156_v12 }
  0xbd   :  { %325 = vmatpush3.bf16.msra.mxu0 %v156_v12 }
  0xbf   :  { %v268_v36 = vpop.permute.xlu1 %267 }
  0xc0   :  { %327 = vmatmul.mubr.msk.bf16.vlgmr.msra.gmra.mrb[0].mxu0 %vm191_vm0, %v347_v13 }
  0xc3   :  { %v292_v47 = vpop.permute.xlu1 %291 }
  0xc4   :  { %v297_v49 = vrot.slane %v292_v47, %v61_v28 }
 0x193   :  { %v328_v17 = vpop.f32.mrb[0].mxu0 }
 0x194   :  { %v241_v18 = vadd.f32 %v328_v17, %v174_v16  ;;  %v232_v19 = vpop.f32.mrb[1].mxu0 }
 0x195   :  { %v233_v20 = vadd.f32 %v232_v19, %v164_v14  ;;  %v329_v21 = vpop.f32.mrb[2].mxu0 }
 0x196   :  { %v235_v23 = vpop.f32.mrb[3].mxu0  ;;  %v244_v24 = vadd.f32 %v329_v21, %v179_v22 }
 0x197   :  { %356 = vtanh.f32 %v233_v20  ;;  %v236_v26 = vadd.f32 %v235_v23, %v169_v15 }
 0x198   :  { %358 = vtanh.f32 %v241_v18 }
 0x199   :  { %360 = vtanh.f32 %v236_v26 }
 0x19a   :  { %362 = vtanh.f32 %v244_v24 }
 0x1a1   :  { %v357_v29 = vpop.eup %356 }
 0x1a2   :  { %v359_v31 = vpop.eup %358  ;;  %v275_v33 = vmul.f32 %v357_v29, %v258_v27 }
 0x1a3   :  { %v361_v32 = vpop.eup %360  ;;  %v277_v37 = vmul.f32 %v359_v31, %v268_v36 }
 0x1a4   :  { %v276_v34 = vmul.f32 %v361_v32, %v263_v30  ;;  %v363_v35 = vpop.eup %362 }
 0x1a5   :  { %v278_v40 = vmul.f32 %v363_v35, %v273_v39 }
 0x1a6   :  { %v279_v38 = vadd.f32 %v276_v34, %v275_v33 }
 0x1a8   :  { %v280_v41 = vadd.f32 %v279_v38, %v277_v37 }
 0x1aa   :  { %v281_v42 = vadd.f32 %v280_v41, %v278_v40 }
 0x1ac   :  { %v282_v43 = vrot.slane %v281_v42, 4 }
 0x1ae   :  { %v283_v44 = vadd.f32 %v282_v43, %v281_v42 }
 0x1b0   :  { %v284_v45 = vrot.slane %v283_v44, 2 }
 0x1b2   :  { %v285_v46 = vadd.f32 %v284_v45, %v283_v44 }
 0x1b4   :  { %v286_v48 = vrot.slane %v285_v46, 1 }
 0x1b6   :  { %v287_v50 = vadd.f32 %v286_v48, %v285_v46 }
 0x1b8   :  { %v298_v51 = vadd.f32 %v297_v49, %v287_v50 }
 0x1ba   :  { %299 = vst [vmem:[#allocation3] sm:$0x1] %v298_v51 }
 0x1bb   :  { %375 = shalt.err (!%p372_p4)
}
 0x1bc   :  { %s376_s16 = scalar_lea.hbm %s522_s7, 16 }
 0x1bd   :  { %p377_p5 = scmp.ne.s32.totalorder %s522_s7, %s376_s16  ;;  %p380_p6 = scmp.lt.u32.totalorder %s376_s16, %s522_s7 }
 0x1bf   :  { %p382_p7 = pnand %p380_p6, %p377_p5 }
 0x1c1   :  { %385 = shalt.err (!%p382_p7)
}
 0x1c2   :  { %309 = dma.vmem_to_hbm [thread:$0]  %s307_s11, 16, %s522_s7, [#allocation4]  }
 0x1c3   :  { %386 = dma.done.wait [#allocation4], 16  }
 0x1c4   :  { %387 = vsyncadd [#allocation4], 4294967280 }
 0x1c5   :  { %313 = vsyncpa [#allocation4], 1 }

</bundles_post_ra>
